<compile_context>
chip_gen: v6e
topology: v6e:2x2x1
jax: 0.10.0
libtpu: 0.0.40
codegen_flags: <defaults>
</compile_context>

<pallas_src>
import functools

import jax
import jax.numpy as jnp
from jax.experimental import pallas as pl
from jax.experimental.pallas import tpu as pltpu

# _get_format_params(ElemFormat.int8) -> q_bits=8, max_norm = 2 - 2**-6
Q_BITS = 8
MAX_NORM = 1.984375
Q_MAX = float(MAX_NORM * 2 ** (Q_BITS - 2))  # 127.0
Q_MIN = -Q_MAX                               # -127.0
EPS = 1e-5

_TARGET_BLOCK_BYTES = 1 * 1024 * 1024   # ~1 MiB input block: bandwidth plateau
_VMEM_TILE_BUDGET = 8 * 1024 * 1024     # 2x in + 2x out blocks + f32 temps
_VMEM_LIMIT_BYTES = 32 * 1024 * 1024    # safe on v5e/v6e/v7x scoped VMEM
_MIN_GRID_STEPS = 4                     # >=2 steps per TC on 2-TC v7x


def _int_quant_kernel(x_ref, o_ref, *, zero_point: bool, reduce_dtype):
    if zero_point:
        # --- Pass 1: per-row min/max statistics (asymmetric find_params). ---
        xr = x_ref[...].astype(jnp.float32)
        max_val = jnp.max(xr, axis=-1, keepdims=True)
        min_val = jnp.min(xr, axis=-1, keepdims=True)
        scales_raw = (max_val - min_val) / (Q_MAX - Q_MIN)
        # zeros computed with the *unclamped* scale, exactly as in torch code
        # (constant rows -> inf/nan, mirroring the PyTorch implementation).
        zeros = jnp.round(Q_MIN - min_val / scales_raw)
        scales = jnp.maximum(scales_raw, EPS)
        inv = 1.0 / scales                       # per-row reciprocal, [tm, 1]
        # --- Pass 2: fused cast -> quantize -> dequantize -> cast -> store. ---
        q = jnp.clip(jnp.round(x_ref[...].astype(jnp.float32) * inv + zeros),
                     Q_MIN, Q_MAX)
        o_ref[...] = ((q - zeros) * scales).astype(o_ref.dtype)
    else:
        # --- Pass 1: abs-max reduce in reduce_dtype (bf16 for bf16 inputs:
        # abs/max are exact in bf16 and use packed VALU work; f32 otherwise). ---
        max_val = jnp.max(jnp.abs(x_ref[...].astype(reduce_dtype)),
                          axis=-1, keepdims=True).astype(jnp.float32)
        scales = jnp.maximum(max_val / Q_MAX, EPS)
        inv = 1.0 / scales                       # per-row reciprocal, [tm, 1]
        # --- Pass 2: fully fused quantize/dequantize straight into the store
        # (symmetric path: no zeros add/sub at all). ---
        o_ref[...] = (jnp.clip(jnp.round(x_ref[...].astype(jnp.float32) * inv),
                               Q_MIN, Q_MAX) * scales).astype(o_ref.dtype)


def _sublane_pack(dtype) -> int:
    itemsize = jnp.dtype(dtype).itemsize
    return max(8, 32 // itemsize)  # f32 -> 8, bf16 -> 16, int8/fp8 -> 32


def _round_up(x: int, m: int) -> int:
    return pl.cdiv(x, m) * m


def _choose_tm(rows: int, hidden: int, dtype) -> int:
    """Row tile: ~1 MiB input blocks, bounded by a conservative VMEM budget,
    and enough grid steps to keep the pipeline (and both v7x TCs) busy."""
    pack = _sublane_pack(dtype)
    itemsize = jnp.dtype(dtype).itemsize
    row_bytes = hidden * itemsize
    # Block-byte target (~1 MiB block hits the measured HBM-roofline plateau).
    tm = max(pack, _TARGET_BLOCK_BYTES // max(row_bytes, 1))
    # VMEM estimate per row: double-buffered in + out blocks (input dtype)
    # plus ~2 f32-sized temporaries for the in-kernel f32 compute.
    per_row_vmem = hidden * (4 * itemsize + 2 * 4)
    tm = min(tm, max(pack, _VMEM_TILE_BUDGET // max(per_row_vmem, 1)))
    # Prefer >= _MIN_GRID_STEPS pipeline steps when there are enough rows
    # (>= 2 steps per TensorCore on 2-TC v7x, DMA overlap on 1-TC v5e/v6e).
    if rows >= _MIN_GRID_STEPS * pack:
        tm = min(tm, _round_up(pl.cdiv(rows, _MIN_GRID_STEPS), pack))
    # Never larger than the (sublane-rounded) row count.
    tm = min(tm, _round_up(rows, pack))
    tm = max(pack, (tm // pack) * pack)
    return int(tm)


def int_fake_quantize(x, *, zero_point: bool = False, tm: int | None = None):
    """Fake-quantize x with int8 per-token (last-axis) quantization."""
    orig_shape = x.shape
    hidden = orig_shape[-1]
    x2 = x.reshape(-1, hidden)
    rows = x2.shape[0]

    if tm is None:
        tm = _choose_tm(rows, hidden, x.dtype)

    # bf16 abs/max is exact; keep the reduce pass packed on bf16-VPU chips.
    reduce_dtype = jnp.bfloat16 if x.dtype == jnp.bfloat16 else jnp.float32

    kernel = functools.partial(_int_quant_kernel, zero_point=zero_point,
                               reduce_dtype=reduce_dtype)

    # No pad / slice round-trips: grid = cdiv(rows, tm).  The last partial
    # block (if any) reads unspecified rows, but every row is quantized
    # independently and out-of-bounds writes are masked, so results are exact.
    out = pl.pallas_call(
        kernel,
        out_shape=jax.ShapeDtypeStruct((rows, hidden), x.dtype),
        grid_spec=pltpu.PrefetchScalarGridSpec(
            num_scalar_prefetch=0,
            grid=(pl.cdiv(rows, tm),),
            in_specs=[pl.BlockSpec((tm, hidden), lambda i: (i, 0))],
            out_specs=pl.BlockSpec((tm, hidden), lambda i: (i, 0)),
        ),
        compiler_params=pltpu.CompilerParams(
            dimension_semantics=("parallel",),
            vmem_limit_bytes=_VMEM_LIMIT_BYTES,
        ),
    )(x2)
    return out.reshape(orig_shape)


def _reference_fake_quantize(x, *, zero_point: bool = False):
    """Pure-JAX reference mirroring the PyTorch forward.

    Uses the same per-row reciprocal-multiply as the kernel; this matches
    torch's `x / scales` except at exact FP halfway rounding boundaries.
    """
    x = x.astype(jnp.float32)
    if zero_point:
        max_val = jnp.max(x, axis=-1, keepdims=True)
        min_val = jnp.min(x, axis=-1, keepdims=True)
        scales_raw = (max_val - min_val) / (Q_MAX - Q_MIN)
        zeros = jnp.round(Q_MIN - min_val / scales_raw)
        scales = jnp.maximum(scales_raw, EPS)
    else:
        max_val = jnp.max(jnp.abs(x), axis=-1, keepdims=True)
        scales = jnp.maximum(max_val / Q_MAX, EPS)
        zeros = jnp.zeros_like(scales)
    inv = 1.0 / scales
    q = jnp.clip(jnp.round(x * inv + zeros), Q_MIN, Q_MAX)
    return (q - zeros) * scales


if __name__ == "__main__":
    key = jax.random.PRNGKey(0)
    k0, k1 = jax.random.split(key)

    # small activation tensor: batch=2, seq=8, hidden=32
    x = jax.random.normal(k0, (2, 8, 32), dtype=jnp.float32) * 3.0

    # symmetric (default configure: group_size=-1, zero_point=False)
    y = jax.block_until_ready(int_fake_quantize(x, zero_point=False))
    y_ref = _reference_fake_quantize(x, zero_point=False)
    assert jnp.allclose(y, y_ref, atol=1e-6, rtol=1e-6), "symmetric path mismatch"

    # asymmetric variant (zero_point=True) for completeness
    y_zp = jax.block_until_ready(int_fake_quantize(x, zero_point=True))
    y_zp_ref = _reference_fake_quantize(x, zero_point=True)
    assert jnp.allclose(y_zp, y_zp_ref, atol=1e-6, rtol=1e-6), "zero-point path mismatch"

    # ragged row count (3*5 = 15 rows) exercises the masked partial-block path
    x_r = jax.random.normal(k1, (3, 5, 256), dtype=jnp.float32) * 2.0
    y_r = jax.block_until_ready(int_fake_quantize(x_r, zero_point=False))
    y_r_ref = _reference_fake_quantize(x_r, zero_point=False)
    assert jnp.allclose(y_r, y_r_ref, atol=1e-6, rtol=1e-6), "ragged-rows mismatch"

    # bf16 input exercises the bf16 reduce pass and a multi-step grid
    x_b = (jax.random.normal(k1, (4, 16, 128), dtype=jnp.float32) * 2.0
           ).astype(jnp.bfloat16)
    y_b = jax.block_until_ready(int_fake_quantize(x_b, zero_point=False))
    y_b_ref = _reference_fake_quantize(x_b, zero_point=False).astype(jnp.bfloat16)
    assert jnp.allclose(y_b.astype(jnp.float32), y_b_ref.astype(jnp.float32),
                        atol=1e-2, rtol=1e-2), "bf16 path mismatch"

    print("KERNEL_OK")
</pallas_src>

<mosaic_0001>
module attributes {stable_mosaic.version = 11 : i64} {
  func.func @_int_quant_kernel(%arg0: i32, %arg1: memref<16x32xf32, #tpu.memory_space<vmem>>, %arg2: memref<16x32xf32, #tpu.memory_space<vmem>>) attributes {dimension_semantics = [#tpu.dimension_semantics<parallel>], iteration_bounds = array<i64: 1>, scalar_prefetch = 0 : i64, scratch_operands = 0 : i64, tpu.core_type = #tpu.core_type<tc>, window_params = [{transform_indices = @transform_0, window_bounds = array<i64: 16, 32>}, {transform_indices = @transform_1, window_bounds = array<i64: 16, 32>}]} {
    %c0 = arith.constant 0 : index
    %c0_0 = arith.constant 0 : index
    %0 = vector.load %arg1[%c0, %c0_0] : memref<16x32xf32, #tpu.memory_space<vmem>>, vector<16x32xf32>
    %1 = math.absf %0 : vector<16x32xf32>
    %cst = arith.constant dense<0xFF800000> : vector<16xf32>
    %2 = vector.multi_reduction <maximumf>, %1, %cst [1] : vector<16x32xf32> to vector<16xf32>
    %3 = vector.shape_cast %2 : vector<16xf32> to vector<16x1xf32>
    %cst_1 = arith.constant 1.270000e+02 : f32
    %4 = vector.broadcast %cst_1 : f32 to vector<16x1xf32>
    %5 = arith.divf %3, %4 : vector<16x1xf32>
    %cst_2 = arith.constant 9.99999974E-6 : f32
    %6 = vector.broadcast %cst_2 : f32 to vector<16x1xf32>
    %7 = arith.maximumf %5, %6 : vector<16x1xf32>
    %cst_3 = arith.constant 1.000000e+00 : f32
    %8 = vector.broadcast %cst_3 : f32 to vector<16x1xf32>
    %9 = arith.divf %8, %7 : vector<16x1xf32>
    %c0_4 = arith.constant 0 : index
    %c0_5 = arith.constant 0 : index
    %10 = vector.load %arg1[%c0_4, %c0_5] : memref<16x32xf32, #tpu.memory_space<vmem>>, vector<16x32xf32>
    %11 = vector.broadcast %9 : vector<16x1xf32> to vector<16x32xf32>
    %12 = arith.mulf %10, %11 : vector<16x32xf32>
    %13 = math.roundeven %12 : vector<16x32xf32>
    %cst_6 = arith.constant -1.270000e+02 : f32
    %cst_7 = arith.constant 1.270000e+02 : f32
    %14 = vector.broadcast %cst_6 : f32 to vector<16x32xf32>
    %15 = arith.maximumf %14, %13 : vector<16x32xf32>
    %16 = vector.broadcast %cst_7 : f32 to vector<16x32xf32>
    %17 = arith.minimumf %16, %15 : vector<16x32xf32>
    %18 = vector.broadcast %7 : vector<16x1xf32> to vector<16x32xf32>
    %19 = arith.mulf %17, %18 : vector<16x32xf32>
    %c0_8 = arith.constant 0 : index
    %c0_9 = arith.constant 0 : index
    %20 = vector.load %arg2[%c0_8, %c0_9] : memref<16x32xf32, #tpu.memory_space<vmem>>, vector<16x32xf32>
    tpu.vector_store %arg2[%c0_8, %c0_9], %19 {strides = array<i32>} : memref<16x32xf32, #tpu.memory_space<vmem>>, vector<16x32xf32>,
    return
  }
  func.func @transform_0(%arg0: i32) -> (i32, i32) {
    %c0_i32 = arith.constant 0 : i32
    %c0_i32_0 = arith.constant 0 : i32
    return %arg0, %c0_i32 : i32, i32
  }
  func.func @transform_1(%arg0: i32) -> (i32, i32) {
    %c0_i32 = arith.constant 0 : i32
    %c0_i32_0 = arith.constant 0 : i32
    return %arg0, %c0_i32 : i32, i32
  }
}

</mosaic_0001>

<bundles_post_ra>
// kernel: tpu_custom_call.1
= control target key start
LH: loop header
LB: loop body
LE: loop exit
PB: predicated region body
PF: predicated region fallthrough
CT: control target
= control target key end

     0   :  { %6 = vsyncpa [#allocation3], 0  ;;  %s172_s0 = inlined_call_operand.hbm [shape: f32[16,32], index: 0, kind: input, shape index: {}]   ;;  %s173_s1 = inlined_call_operand.hbm [shape: f32[16,32], index: 1, kind: output, shape index: {}]  }
   0x1   :  { %7 = vsyncpa [#allocation4], 0  ;;  %s142_s6 = smov [#allocation2]  }
   0x2   :  { %s13_s7 = sshll.u32 %s142_s6, 4  ;;  %s14_s7 = int_to_ptr.vmem [resolvable:$true] %s13_s7 }
   0x3   :  { %s106_s8 = scalar_lea.vmem %s14_s7, 256  ;;  %p111_p1 = scmp.lt.s32.totalorder %s14_s7, %s14_s7 }
   0x4   :  { %p107_p0 = scmp.ne.s32.totalorder %s14_s7, %s106_s8  ;;  %p112_p2 = scmp.lt.s32.totalorder %s106_s8, %s106_s8 }
   0x6   :  { %p113_p3 = por %p112_p2, %p111_p1 }
   0x8   :  { %p114_p4 = pnand %p113_p3, %p107_p0 }
   0xa   :  { %117 = shalt.err (!%p114_p4)
}
   0xb   :  { %s143_s9 = smov 128   ;;  %s144_s10 = smov 8  }
   0xc   :  { %19 = dma.hbm_to_vmem [thread:$0]  %s172_s0, 256, %s14_s7, [#allocation3], %s143_s9, %s143_s9, %s144_s10  }
   0xd   :  { %138 = dma.done.wait [#allocation3], 256  }
   0xe   :  { %139 = vsyncadd [#allocation3], 4294967040  ;;  %v23_v0 = vld [vmem:[#allocation2] sm:$0xff]  ;;  %vm27_vm0 = vcmask 261120   ;;  %v24_v1 = vld [vmem:[#allocation2 + $0x8] sm:$0xff]  ;;  %s145_s0 = smov [#allocation5]  }
   0xf   :  { %v25_v2 = vand.u32 2147483647, %v23_v0  ;;  %v26_v3 = vand.u32 2147483647, %v24_v1  ;;  %s60_s13 = sshll.u32 %s145_s0, 4  ;;  %s61_s13 = int_to_ptr.vmem [resolvable:$true] %s60_s13 }
  0x10   :  { %s118_s14 = scalar_lea.vmem %s61_s13, 256  ;;  %p123_p6 = scmp.lt.s32.totalorder %s61_s13, %s61_s13 }
  0x11   :  { %v28_v4 = vsel %vm27_vm0, %v25_v2, -inf  ;;  %v31_v5 = vsel %vm27_vm0, %v26_v3, -inf  ;;  %p119_p5 = scmp.ne.s32.totalorder %s61_s13, %s118_s14  ;;  %p124_p7 = scmp.lt.s32.totalorder %s118_s14, %s118_s14 }
  0x12   :  { %29 = vmax.xlane.f32.xlu0 %v28_v4 }
  0x13   :  { %p125_p8 = por %p124_p7, %p123_p6 }
  0x15   :  { %p126_p9 = pnand %p125_p8, %p119_p5 }
  0x16   :  { %32 = vmax.xlane.f32.xlu0 %v31_v5 }
  0x9b   :  { %v30_v6 = vpop.xlane.xlu0 %29 }
  0x9c   :  { %v35_v7 = vmul.f32 0.007874016, %v30_v6 }
  0x9e   :  { %v37_v8 = vmax.f32 %v35_v7, 1e-05 }
  0x9f   :  { %v33_v9 = vpop.xlane.xlu0 %32 }
  0xa0   :  { %94 = vrcp.f32 %v37_v8  ;;  %v36_v10 = vmul.f32 0.007874016, %v33_v9 }
  0xa2   :  { %v38_v11 = vmax.f32 %v36_v10, 1e-05 }
  0xa4   :  { %96 = vrcp.f32 %v38_v11 }
  0xad   :  { %v95_v12 = vpop.eup %94 }
  0xae   :  { %v43_v13 = vmul.f32 %v95_v12, %v23_v0 }
  0xb0   :  { %v76_v14 = vcvt.f32.s32 %v43_v13  ;;  %v74_v18 = vand.u32 2147483647, %v43_v13  ;;  %v79_v20 = vand.u32 2147483648, %v43_v13 }
  0xb1   :  { %v97_v15 = vpop.eup %96 }
  0xb2   :  { %v77_v16 = vcvt.s32.f32 %v76_v14  ;;  %v44_v17 = vmul.f32 %v97_v15, %v24_v1  ;;  %vm75_vm1 = vcmp.lt.f32.partialorder %v74_v18, 8388608.0 }
  0xb4   :  { %v78_v19 = vand.u32 2147483647, %v77_v16  ;;  %v84_v21 = vcvt.f32.s32 %v44_v17  ;;  %v82_v24 = vand.u32 2147483647, %v44_v17  ;;  %v87_v27 = vand.u32 2147483648, %v44_v17 }
  0xb6   :  { %v80_v22 = vor.u32 %v79_v20, %v78_v19  ;;  %v85_v23 = vcvt.s32.f32 %v84_v21  ;;  %vm83_vm2 = vcmp.lt.f32.partialorder %v82_v24, 8388608.0 }
  0xb8   :  { %v81_v25 = vsel %vm75_vm1, %v80_v22, %v43_v13  ;;  %v86_v26 = vand.u32 2147483647, %v85_v23 }
  0xb9   :  { %v72_v28 = vclamps-f32 %v81_v25, 127.0 }
  0xba   :  { %v88_v29 = vor.u32 %v87_v27, %v86_v26 }
  0xbb   :  { %v51_v30 = vmul.f32 %v72_v28, %v37_v8 }
  0xbc   :  { %v89_v31 = vsel %vm83_vm2, %v88_v29, %v44_v17 }
  0xbd   :  { %53 = vst.msk [vmem:[#allocation5] sm:$0xff] %vm27_vm0, %v51_v30  ;;  %v73_v32 = vclamps-f32 %v89_v31, 127.0 }
  0xbf   :  { %v52_v33 = vmul.f32 %v73_v32, %v38_v11 }
  0xc1   :  { %54 = vst.msk [vmem:[#allocation5 + $0x8] sm:$0xff] %vm27_vm0, %v52_v33 }
  0xc2   :  { %129 = shalt.err (!%p126_p9)
}
  0xc3   :  { %66 = dma.vmem_to_hbm [thread:$0]  %s61_s13, 256, %s173_s1, [#allocation4], %s143_s9, %s143_s9, %s144_s10  }
  0xc4   :  { %140 = dma.done.wait [#allocation4], 256  }
  0xc5   :  { %141 = vsyncadd [#allocation4], 4294967040 }
  0xc6   :  { %70 = vsyncpa [#allocation3], 1 }
  0xc7   :  { %71 = vsyncpa [#allocation4], 1 }

</bundles_post_ra>
